<compile_context>
chip_gen: v7x
topology: tpu7x:2x2x1
jax: 0.10.0
libtpu: 0.0.40
codegen_flags: <defaults>
</compile_context>

<pallas_src>
import functools

import jax
import jax.numpy as jnp
from jax import lax
from jax.experimental import pallas as pl
from jax.experimental.pallas import tpu as pltpu


def _round_up(x, m):
    return (x + m - 1) // m * m


def _vmem_capacity_bytes():
    """Physical VMEM per TensorCore; conservative (v7x) fallback if unknown."""
    try:
        cap = int(pltpu.get_tpu_info().vmem_capacity_bytes)
        if cap > 0:
            return cap
    except Exception:
        pass
    return 64 * 1024 * 1024


def _nce_kernel(pred_ref, labels_ref, out_ref, *, num_rows):
    # pred_ref:   (tile_n, C)   logits in their native dtype (no lane padding
    #                           visible: block last-dim == full class extent)
    # labels_ref: (tile_n, 1)   int32 labels (garbage on pad rows; masked below)
    # out_ref:    (1, 8, 128)   f32; partial loss sum broadcast over the tile
    pred = pred_ref[...]                                   # native dtype
    tn, c = pred.shape
    lbl = labels_ref[...]                                  # (tn, 1) int32

    # Row max on the native dtype (exact), single f32 "shifted" stream after.
    m = jnp.max(pred, axis=1, keepdims=True).astype(jnp.float32)     # (tn, 1)
    shifted = pred.astype(jnp.float32) - m                            # (tn, c)

    # logsumexp: one exp per element, ONE log per row (EUP-light).
    e = jnp.exp(shifted)
    lse_s = jnp.log(jnp.sum(e, axis=1, keepdims=True))               # lse - m

    # sum_c (pred_c - m): shift-invariant denominator piece (no cancellation).
    row_sum_s = jnp.sum(shifted, axis=1, keepdims=True)              # (tn, 1)

    # pred[i, labels[i]] - m via one-hot lane compare + reduce.
    class_ids = lax.broadcasted_iota(jnp.int32, (tn, c), 1)
    picked_s = jnp.sum(jnp.where(class_ids == lbl, shifted, 0.0),
                       axis=1, keepdims=True)                        # (tn, 1)

    num = lse_s - picked_s                                 # -log_softmax[i, label]
    den = jnp.float32(c) * lse_s - row_sum_s               # -sum_c log_softmax[i, c]
    loss_row = num / den                                   # (tn, 1)

    # Mask rows past N (partial last block: undefined block contents -> 0).
    row_ids = pl.program_id(0) * tn + lax.broadcasted_iota(jnp.int32, (tn, 1), 0)
    masked = jnp.where(row_ids < num_rows, loss_row, 0.0)

    # One lane-dense unmasked store per grid step.
    out_ref[...] = jnp.broadcast_to(jnp.sum(masked).astype(jnp.float32),
                                    (1, 8, 128))


def nce_loss(pred, labels, num_classes=None, scale=1.0, tile_n=None):
    """pred (N, C) float logits (any float dtype), labels (N,) int. Returns scalar."""
    n, c = pred.shape
    if num_classes is not None and int(num_classes) != c:
        raise ValueError("num_classes must match pred.shape[1]")
    itemsize = jnp.dtype(pred.dtype).itemsize

    # Per-generation budgets: v5e/v6e have 128 MiB VMEM, v7x only 64 MiB.
    vmem_cap = _vmem_capacity_bytes()
    if vmem_cap >= 100 * 1024 * 1024:            # v5e / v6e
        budget_bytes = 72 * 1024 * 1024
        vmem_limit = 96 * 1024 * 1024
    else:                                         # v7x
        budget_bytes = 36 * 1024 * 1024
        vmem_limit = 48 * 1024 * 1024

    if tile_n is None:
        # VMEM-resident cost per row: 2 double-buffered native-dtype input
        # buffers + ~4 f32-tile temporaries of headroom; account for the
        # physical 128-lane padding of the class axis.
        c_lanes = _round_up(c, 128)
        bytes_per_row = c_lanes * (2 * itemsize + 4 * 4)
        tile_n = max(8, budget_bytes // max(bytes_per_row, 1))
    tile_n = max(8, (int(tile_n) // 8) * 8)       # sublane multiple

    # Keep >= 2 grid steps when N allows: on v7x both TensorCores get work
    # under "parallel"; extra steps cost ~0.35 us each on v5e/v6e (negligible).
    half = _round_up(pl.cdiv(n, 2), 8)
    tile_n = min(tile_n, max(8, half))
    grid_n = pl.cdiv(n, tile_n)

    labels2d = labels.astype(jnp.int32).reshape(n, 1)

    kernel = functools.partial(_nce_kernel, num_rows=n)

    cost = pl.CostEstimate(
        flops=8 * n * c,
        transcendentals=n * c + n,                # one exp/elem + one log/row
        bytes_accessed=n * c * itemsize + n * 4 + grid_n * 8 * 128 * 4,
    )

    out = pl.pallas_call(
        kernel,
        out_shape=jax.ShapeDtypeStruct((grid_n, 8, 128), jnp.float32),
        grid_spec=pltpu.PrefetchScalarGridSpec(
            num_scalar_prefetch=0,
            grid=(grid_n,),
            in_specs=[
                # Full class extent as the block last dim: no host-side pad,
                # Mosaic masks the lane remainder internally.
                pl.BlockSpec((tile_n, c), lambda i: (i, 0)),
                pl.BlockSpec((tile_n, 1), lambda i: (i, 0)),
            ],
            out_specs=pl.BlockSpec((1, 8, 128), lambda i: (i, 0, 0)),
        ),
        compiler_params=pltpu.CompilerParams(
            dimension_semantics=("parallel",),    # independent tiles -> megacore
            vmem_limit_bytes=vmem_limit,
        ),
        cost_estimate=cost,
    )(pred, labels2d)                             # native dtype, no host upcast

    total = jnp.sum(out[:, 0, 0])
    return jnp.float32(scale) * (total / jnp.float32(n))


def _reference(pred, labels, scale=1.0):
    # pure-JAX reference mirroring the PyTorch module
    logp = jax.nn.log_softmax(pred.astype(jnp.float32), axis=1)
    picked = jnp.take_along_axis(logp, labels[:, None].astype(jnp.int32), axis=1)[:, 0]
    loss = (-picked) / (-jnp.sum(logp, axis=1))
    return scale * jnp.mean(loss)


if __name__ == "__main__":
    num_classes = 10
    batch = 16

    key = jax.random.PRNGKey(0)
    k1, k2, k3, k4 = jax.random.split(key, 4)

    # --- check 1: f32 logits, auto tile (>= 2 grid steps) ---
    pred = jax.random.normal(k1, (batch, num_classes), dtype=jnp.float32) * 3.0
    labels = jax.random.randint(k2, (batch,), 0, num_classes, dtype=jnp.int32)
    loss = nce_loss(pred, labels, num_classes=num_classes, scale=1.0)
    jax.block_until_ready(loss)
    ref = _reference(pred, labels, 1.0)
    assert jnp.allclose(loss, ref, rtol=1e-5, atol=1e-5), (loss, ref)

    # --- check 2: partial last block (N not a multiple of tile_n) ---
    batch2 = 20
    pred2 = jax.random.normal(k3, (batch2, num_classes), dtype=jnp.float32)
    labels2 = jax.random.randint(k4, (batch2,), 0, num_classes, dtype=jnp.int32)
    loss2 = nce_loss(pred2, labels2, num_classes=num_classes, scale=2.0, tile_n=8)
    jax.block_until_ready(loss2)
    ref2 = _reference(pred2, labels2, 2.0)
    assert jnp.allclose(loss2, ref2, rtol=1e-5, atol=1e-5), (loss2, ref2)

    # --- check 3: bf16 logits shipped to the kernel without host upcast ---
    pred_bf = pred.astype(jnp.bfloat16)
    loss_bf = nce_loss(pred_bf, labels, num_classes=num_classes, scale=1.0)
    jax.block_until_ready(loss_bf)
    ref_bf = _reference(pred_bf.astype(jnp.float32), labels, 1.0)
    assert jnp.allclose(loss_bf, ref_bf, rtol=1e-4, atol=1e-4), (loss_bf, ref_bf)

    # --- check 4: offset-heavy logits (shift-invariant denominator) ---
    pred_off = pred + 200.0
    loss_off = nce_loss(pred_off, labels, num_classes=num_classes, scale=1.0)
    jax.block_until_ready(loss_off)
    ref_off = _reference(pred_off, labels, 1.0)
    assert jnp.allclose(loss_off, ref_off, rtol=1e-4, atol=1e-4), (loss_off, ref_off)

    print("KERNEL_OK")
</pallas_src>

<mosaic_0001>
module attributes {stable_mosaic.version = 11 : i64} {
  func.func @_nce_kernel(%arg0: i32, %arg1: memref<8x10xf32, #tpu.memory_space<vmem>>, %arg2: memref<8x1xi32, #tpu.memory_space<vmem>>, %arg3: memref<1x8x128xf32, #tpu.memory_space<vmem>>) attributes {dimension_semantics = [#tpu.dimension_semantics<parallel>], iteration_bounds = array<i64: 2>, scalar_prefetch = 0 : i64, scratch_operands = 0 : i64, tpu.core_type = #tpu.core_type<tc>, window_params = [{transform_indices = @transform_0, window_bounds = array<i64: 8, 10>}, {transform_indices = @transform_1, window_bounds = array<i64: 8, 1>}, {transform_indices = @transform_2, window_bounds = array<i64: 1, 8, 128>}]} {
    %c0 = arith.constant 0 : index
    %c0_0 = arith.constant 0 : index
    %0 = vector.load %arg1[%c0, %c0_0] : memref<8x10xf32, #tpu.memory_space<vmem>>, vector<8x10xf32>
    %c0_1 = arith.constant 0 : index
    %c0_2 = arith.constant 0 : index
    %1 = vector.load %arg2[%c0_1, %c0_2] : memref<8x1xi32, #tpu.memory_space<vmem>>, vector<8x1xi32>
    %cst = arith.constant dense<0xFF800000> : vector<8xf32>
    %2 = vector.multi_reduction <maximumf>, %0, %cst [1] : vector<8x10xf32> to vector<8xf32>
    %3 = vector.shape_cast %2 : vector<8xf32> to vector<8x1xf32>
    %4 = vector.broadcast %3 : vector<8x1xf32> to vector<8x10xf32>
    %5 = arith.subf %0, %4 : vector<8x10xf32>
    %6 = math.exp %5 : vector<8x10xf32>
    %cst_3 = arith.constant dense<0.000000e+00> : vector<8xf32>
    %7 = vector.multi_reduction <add>, %6, %cst_3 [1] : vector<8x10xf32> to vector<8xf32>
    %8 = vector.shape_cast %7 : vector<8xf32> to vector<8x1xf32>
    %9 = math.log %8 : vector<8x1xf32>
    %cst_4 = arith.constant dense<0.000000e+00> : vector<8xf32>
    %10 = vector.multi_reduction <add>, %5, %cst_4 [1] : vector<8x10xf32> to vector<8xf32>
    %11 = vector.shape_cast %10 : vector<8xf32> to vector<8x1xf32>
    %12 = tpu.iota {dimensions = array<i32: 1>} : vector<8x10xi32>
    %13 = vector.broadcast %1 : vector<8x1xi32> to vector<8x10xi32>
    %14 = arith.cmpi eq, %12, %13 : vector<8x10xi32>
    %cst_5 = arith.constant 0.000000e+00 : f32
    %15 = vector.broadcast %cst_5 : f32 to vector<8x10xf32>
    %16 = arith.select %14, %5, %15 : vector<8x10xi1>, vector<8x10xf32>
    %cst_6 = arith.constant dense<0.000000e+00> : vector<8xf32>
    %17 = vector.multi_reduction <add>, %16, %cst_6 [1] : vector<8x10xf32> to vector<8xf32>
    %18 = vector.shape_cast %17 : vector<8xf32> to vector<8x1xf32>
    %19 = arith.subf %9, %18 : vector<8x1xf32>
    %cst_7 = arith.constant 1.000000e+01 : f32
    %20 = vector.broadcast %cst_7 : f32 to vector<8x1xf32>
    %21 = arith.mulf %20, %9 : vector<8x1xf32>
    %22 = arith.subf %21, %11 : vector<8x1xf32>
    %23 = arith.divf %19, %22 : vector<8x1xf32>
    %c8_i32 = arith.constant 8 : i32
    %24 = arith.muli %arg0, %c8_i32 : i32
    %25 = tpu.iota {dimensions = array<i32: 0>} : vector<8x1xi32>
    %26 = vector.broadcast %24 : i32 to vector<8x1xi32>
    %27 = arith.addi %26, %25 : vector<8x1xi32>
    %c16_i32 = arith.constant 16 : i32
    %28 = vector.broadcast %c16_i32 : i32 to vector<8x1xi32>
    %29 = arith.cmpi slt, %27, %28 : vector<8x1xi32>
    %cst_8 = arith.constant 0.000000e+00 : f32
    %30 = vector.broadcast %cst_8 : f32 to vector<8x1xf32>
    %31 = arith.select %29, %23, %30 : vector<8x1xi1>, vector<8x1xf32>
    %32 = vector.shape_cast %31 : vector<8x1xf32> to vector<1x8x1xf32>
    %cst_9 = arith.constant dense<0.000000e+00> : vector<1xf32>
    %33 = vector.multi_reduction <add>, %32, %cst_9 [1, 2] : vector<1x8x1xf32> to vector<1xf32>
    %34 = vector.shape_cast %33 : vector<1xf32> to vector<1x1x1xf32>
    %35 = vector.extract %34[0, 0, 0] : f32 from vector<1x1x1xf32>
    %36 = vector.broadcast %35 : f32 to vector<1x8x128xf32>
    %c0_10 = arith.constant 0 : index
    %c0_11 = arith.constant 0 : index
    %c0_12 = arith.constant 0 : index
    %37 = vector.load %arg3[%c0_10, %c0_11, %c0_12] : memref<1x8x128xf32, #tpu.memory_space<vmem>>, vector<1x8x128xf32>
    tpu.vector_store %arg3[%c0_10, %c0_11, %c0_12], %36 {strides = array<i32>} : memref<1x8x128xf32, #tpu.memory_space<vmem>>, vector<1x8x128xf32>,
    return
  }
  func.func @transform_0(%arg0: i32) -> (i32, i32) {
    %c0_i32 = arith.constant 0 : i32
    %c0_i32_0 = arith.constant 0 : i32
    return %arg0, %c0_i32 : i32, i32
  }
  func.func @transform_1(%arg0: i32) -> (i32, i32) {
    %c0_i32 = arith.constant 0 : i32
    %c0_i32_0 = arith.constant 0 : i32
    return %arg0, %c0_i32 : i32, i32
  }
  func.func @transform_2(%arg0: i32) -> (i32, i32, i32) {
    %c0_i32 = arith.constant 0 : i32
    %c0_i32_0 = arith.constant 0 : i32
    %c0_i32_1 = arith.constant 0 : i32
    return %arg0, %c0_i32, %c0_i32_0 : i32, i32, i32
  }
}

</mosaic_0001>

<bundles_post_ra>
// kernel: tpu_custom_call.1
= control target key start
LH: loop header
LB: loop body
LE: loop exit
PB: predicated region body
PF: predicated region fallthrough
CT: control target
= control target key end

     0   :  { %7 = vsyncpa [#allocation3], 0  ;;  %s543_s0 = inlined_call_operand.vmem [shape: f32[16,10], index: 0, kind: input, shape index: {}]   ;;  %s544_s1 = inlined_call_operand.vmem [shape: s32[16,1], index: 1, kind: input, shape index: {}]   ;;  %s545_s2 = inlined_call_operand.hbm [shape: f32[2,8,128], index: 2, kind: output, shape index: {}]  }
   0x1   :  { %9 = vsyncpa [#allocation3 + $0x1], 0  ;;  %s435_s9 = smov 0   ;;  %s437_s10 = smov 0  }
   0x2   :  { %s439_s11 = smov 0   ;;  %s441_s12 = smov 0  }
   0x3 LB: > { %s456_s13 = sadd.s32 4294967295, %s416_s12   ;;  %s293_s14 = sadd.s32 4294967294, %s416_s12   ;;  %s416_s12 = sphi %s441_s12, %s551_s12   ;;  %s412_s11 = sphi %s439_s11, %s550_s11   ;;  %s408_s10 = sphi %s437_s10, %s549_s10   ;;  %s404_s9 = sphi %s435_s9, %s548_s9  }
   0x4   : > { %s460_s15 = sadd.s32 1, %s416_s12   ;;  %s74_s16 = sadd.s32 1, %s412_s11 }
   0x5   : > { %s71_s17 = ssub.s32 %s416_s12, %s460_s15  ;;  %p84_p0 = scmp.ne.s32.totalorder %s412_s11, %s408_s10 }
   0x6   : > { %p72_p1 = scmp.eq.s32.totalorder %s71_s17, 0  ;;  %p85_p2 = scmp.eq.s32.totalorder %s456_s13, 1 }
   0x7   : > { %p90_p3 = scmp.ne.s32.totalorder %s408_s10, %s404_s9  ;;  %p91_p4 = scmp.eq.s32.totalorder %s293_s14, 1 }
   0x8   : > { %s471_s18 = scalar_select %p72_p1, %s412_s11, %s74_s16  }
   0x9   : > { %p473_p5 = por %p85_p2, %p84_p0  ;;  %p477_p6 = por %p91_p4, %p90_p3 }
   0xa   : > { %p296_p7 = scmp.ge.s32.totalorder %s416_s12, 1  ;;  %p123_p8 = scmp.lt.s32.totalorder %s416_s12, 3 }
   0xc   : > { %p124_p9 = pnand %p296_p7, %p123_p8 }
   0xd   : > { %p148_p10 = scmp.lt.s32.totalorder (!%p124_p9), %s456_s13, 1  ;;  %v418_v0 = vmov (!%p124_p9), 0   ;;  %vm158_vm0 = vcmask (!%p124_p9), 80896   ;;  %v173_v7 = vlaneseq (!%p124_p9)  ;;  %s300_s29 = sshll.u32 (!%p124_p9), %s456_s13, 3  ;;  %vm195_vm3 = vcmask (!%p124_p9), 7168  }
   0xe   : > { %127 = sbr.rel (%p124_p9) target bundleno = 578 (0x242), region = 28  ;;  %347 = vset.pattern.permute.xlu0 (!%p124_p9), %v418_v0  ;;  %v191_v22 = vstv (!%p124_p9), %s300_s29  ;;  %s145_s30 = sand.u32 (!%p124_p9), 1, %s408_s10  }
   0xf   : > { %v174_v8 = vand.u32 (!%p124_p9), 127, %v173_v7  ;;  %v190_v21 = vshrl.u32 (!%p124_p9), %v173_v7, 7  ;;  %s297_s3 = sshll.u32 (!%p124_p9), %s145_s30, 3  ;;  %s302_s6 = sshll.u32 (!%p124_p9), %s456_s13, 7 }
  0x10   : > { %s147_s4 = scalar_lea.vmem (!%p124_p9), [#allocation2], %s297_s3  ;;  %s503_s16 = scalar_lea.hbm (!%p124_p9), %s545_s2, %s302_s6 }
  0x11   : > { %v192_v23 = vadd.s32 (!%p124_p9), %v191_v22, %v190_v21  ;;  %s222_s5 = sshll.u32 (!%p124_p9), %s147_s4, 4  ;;  %s209_s17 = scalar_lea.sflag (!%p124_p9), [#allocation3], %s145_s30  ;;  %s498_s5 = int_to_ptr.vmem [resolvable:$true] %s222_s5 }
  0x13   : > { %vm193_vm2 = vcmp.lt.s32.totalorder (!%p124_p9), %v192_v23, 16 }
  0x15   : > { %s149_s21 = scalar_select %p148_p10, %s456_s13, 1 }
  0x16   : > { %s419_s13 = smov [#allocation2]  }
  0x17   : > { %s298_s22 = sshll.u32 %s149_s21, 3  ;;  %s354_s21 = scalar_lea.vmem %s498_s5, 128 }
  0x18   : > { %s151_s25 = scalar_lea.vmem %s543_s0, %s298_s22  ;;  %s155_s28 = scalar_lea.vmem %s544_s1, %s298_s22 }
  0x19   : > { %v156_v1 = vld [vmem:[%s151_s25] sm:$0xff]  ;;  %p355_p11 = scmp.ne.s32.totalorder %s498_s5, %s354_s21  ;;  %s358_s22 = sshll.u32 %s419_s13, 4  ;;  %s359_s22 = int_to_ptr.vmem [resolvable:$false] %s358_s22 }
  0x1a   : > { %v159_v2 = vsel %vm158_vm0, %v156_v1, -inf  ;;  %v157_v3 = vld [vmem:[%s155_s28] sm:$0xff]  ;;  %s360_s23 = scalar_lea.vmem %s359_s22, 256  ;;  %p361_p0 = scmp.lt.s32.totalorder %s498_s5, %s359_s22 }
  0x1b   : > { %160 = vmax.xlane.f32.xlu0 %v159_v2  ;;  %p356_p12 = pnand %p355_p11, %p473_p5  ;;  %p362_p1 = scmp.lt.s32.totalorder %s360_s23, %s354_s21 }
  0x1d   : > { %p357_p13 = pneg %p356_p12  ;;  %p363_p2 = por %p362_p1, %p361_p0 }
  0x1f   : > { %p364_p3 = pnand %p363_p2, %p357_p13 }
  0x31   : > { %176 = vperm.xlu0 %347, %v157_v3  }
  0xa8   : > { %v161_v4 = vpop.xlane.xlu0 %160 }
  0xa9   : > { %v162_v5 = vsub.f32 %v156_v1, %v161_v4 }
  0xab   : > { %v163_v6 = vmul.f32 1.442695, %v162_v5  ;;  %v170_v12 = vsel %vm158_vm0, %v162_v5, 0.0 }
  0xad   : > { %348 = vpow2.f32 %v163_v6 }
  0xb0   : > { %v177_v10 = vpop.permute.xlu0 %176 }
  0xb1   : > { %vm178_vm1 = vcmp.eq.s32.totalorder %v174_v8, %v177_v10 }
  0xb2   : > { %v179_v13 = vsel %vm178_vm1, %v162_v5, 0.0 }
  0xb3   : > { %v180_v14 = vsel %vm158_vm0, %v179_v13, 0.0 }
  0xb7   : > { %v349_v9 = vpop.eup %348 }
  0xb8   : > { %v165_v11 = vsel %vm158_vm0, %v349_v9, 0.0 }
  0xb9   : > { %166 = vadd.xlane.f32.xlu1 %v165_v11 }
  0xbd   : > { %171 = vadd.xlane.f32.xlu1 %v170_v12 }
  0xc1   : > { %181 = vadd.xlane.f32.xlu1 %v180_v14 }
 0x146   : > { %v167_v15 = vpop.xlane.xlu1 %166 }
 0x147   : > { %350 = vlog2.f32 %v167_v15 }
 0x14a   : > { %v172_v19 = vpop.xlane.xlu1 %171 }
 0x14e   : > { %v182_v24 = vpop.xlane.xlu1 %181 }
 0x151   : > { %v351_v16 = vpop.eup %350 }
 0x152   : > { %v169_v17 = vmul.f32 0.6931472, %v351_v16 }
 0x154   : > { %v184_v18 = vmul.f32 10.0, %v169_v17  ;;  %v183_v25 = vsub.f32 %v169_v17, %v182_v24 }
 0x156   : > { %v185_v20 = vsub.f32 %v184_v18, %v172_v19 }
 0x158   : > { %352 = vrcp.f32 %v185_v20 }
 0x162   : > { %v353_v26 = vpop.eup %352 }
 0x163   : > { %v187_v27 = vmul.f32 %v353_v26, %v183_v25 }
 0x165   : > { %v194_v28 = vsel %vm193_vm2, %v187_v27, 0.0 }
 0x166   : > { %v196_v29 = vsel %vm195_vm3, %v194_v28, 0.0 }
 0x167   : > { %197 = vadd.xlane.f32.xlu1 %v196_v29 }
 0x1f4   : > { %v198_v30 = vpop.xlane.xlu1 %197 }
 0x1f5   : > { %v199_v31 = vrot.slane %v198_v30, 4 }
 0x1f7   : > { %v200_v32 = vadd.f32 %v199_v31, %v198_v30 }
 0x1f9   : > { %v201_v33 = vrot.slane %v200_v32, 2 }
 0x1fb   : > { %v202_v34 = vadd.f32 %v201_v33, %v200_v32 }
 0x1fd   : > { %v203_v35 = vrot.slane %v202_v34, 1 }
 0x1ff   : > { %v204_v36 = vadd.f32 %v203_v35, %v202_v34 }
 0x201   : > { %305 = vpush %v204_v36 }
 0x232   : > { %s306_s7 = spop %305 }
 0x233   : > { %v206_v37 = vstv %s306_s7 }
 0x234   : > { %207 = vst [vmem:[%s147_s4] sm:$0xff] %v206_v37 }
 0x235   : > { %367 = shalt.err (!%p364_p3)
}
 0x236   : > { %s368_s24 = scalar_lea.hbm %s503_s16, 128  ;;  %s372_s27 = scalar_lea.hbm %s545_s2, 256 }
 0x237   : > { %p369_p4 = scmp.ne.s32.totalorder %s503_s16, %s368_s24  ;;  %p373_p9 = scmp.lt.u32.totalorder %s503_s16, %s545_s2 }
 0x238   : > { %p374_p10 = scmp.lt.u32.totalorder %s372_s27, %s368_s24  ;;  %p376_p12 = scmp.lt.u32.totalorder %s368_s24, %s503_s16 }
 0x239   : > { %p370_p7 = pnand %p369_p4, %p473_p5 }
 0x23a   : > { %p375_p11 = por %p374_p10, %p373_p9 }
 0x23b   : > { %p371_p8 = pneg %p370_p7 }
 0x23c   : > { %p377_p13 = por %p376_p12, %p375_p11 }
 0x23e   : > { %p378_p0 = pnand %p377_p13, %p371_p8 }
 0x240   : > { %381 = shalt.err (!%p378_p0)
}
 0x241   : > { %307 = dma.vmem_to_hbm [thread:$0]  (%p473_p5), %s498_s5, 128, %s503_s16, %s209_s17  }
 0x242 PF: > { %p313_p1 = scmp.ge.s32.totalorder %s416_s12, 2  ;;  %s234_s30 = sand.u32 1, %s404_s9  }
 0x243   : > { %s235_s3 = scalar_lea.sflag [#allocation3], %s234_s30 }
 0x244   : > { %p310_p2 = pnand %p313_p1, %p477_p6 }
 0x246   : > { %399 = dma.done.wait (!%p310_p2), %s235_s3, 128  }
 0x247   : > { %401 = vsyncadd (!%p310_p2), %s235_s3, 4294967168  ;;  %p12_p3 = scmp.ge.s32.totalorder %s460_s15, 4   ;;  %s548_s9 = smov %s408_s10 }
 0x248   : > { %s549_s10 = smov %s412_s11  ;;  %s550_s11 = smov %s471_s18 }
 0x249   : > { %s551_s12 = smov %s460_s15  ;;  %14 = sbr.rel (!%p12_p3) target bundleno = 3 (0x3), region = 66 }
 0x250   :  { %240 = vsyncpa [#allocation3], 1 }
 0x251   :  { %242 = vsyncpa [#allocation3 + $0x1], 1 }

</bundles_post_ra>
